<compile_context>
chip_gen: v6e
topology: v6e:2x2x1
jax: 0.10.0
libtpu: 0.0.40
codegen_flags: <defaults>
</compile_context>

<pallas_src>
import jax
import jax.numpy as jnp
from jax.experimental import pallas as pl
from jax.experimental.pallas import tpu as pltpu


def _round_up(x, m):
    return ((x + m - 1) // m) * m


def _embedding_gather_kernel(ids_ref, table_hbm, out_ref, gather_buf, sems):
    # ids_ref   : SMEM (T_pad,) int32      -- scalar-prefetched token ids
    # table_hbm : HBM  (V, Dp)  float32    -- embedding table, never copied whole
    # out_ref   : VMEM (TT, Dp) float32    -- output block for this grid step
    # gather_buf: VMEM (TT, Dp) float32    -- DMA landing buffer
    # sems      : DMA semaphores, shape (TT,)
    i = pl.program_id(0)
    tt, _ = out_ref.shape
    base = i * tt

    # Issue all row gathers first (overlapped DMAs), then wait on all of them.
    copies = []
    for t in range(tt):  # tt is small and static -> fully unrolled
        row = ids_ref[base + t]
        cp = pltpu.make_async_copy(
            table_hbm.at[pl.ds(row, 1)],      # (1, Dp) row in HBM
            gather_buf.at[pl.ds(t, 1)],       # (1, Dp) row in VMEM
            sems.at[t],
        )
        cp.start()
        copies.append(cp)
    for cp in copies:
        cp.wait()

    # Single full-width (lane-dense, Dp % 128 == 0) store into the output block.
    out_ref[...] = gather_buf[...]


def embedding_forward(ids, table, *, token_tile=32):
    """ids: (B, S) int32, table: (V, D) float32 -> (B, S, D) float32."""
    B, S = ids.shape
    V, D = table.shape
    T = B * S

    # Lane-dense embedding dim (no-op when D is already a multiple of 128).
    Dp = _round_up(D, 128)
    table_p = table if Dp == D else jnp.pad(table, ((0, 0), (0, Dp - D)))

    # Token tile: multiple of 8 sublanes, capped by the (padded) token count.
    token_tile = max(8, min(int(token_tile), _round_up(T, 8)))
    token_tile = _round_up(token_tile, 8)
    T_pad = _round_up(T, token_tile)

    ids_flat = ids.reshape(T).astype(jnp.int32)
    if T_pad != T:
        # Padding tokens point at row 0 (the padding_idx row) -- always in range.
        ids_flat = jnp.pad(ids_flat, (0, T_pad - T))

    grid = (T_pad // token_tile,)

    out_flat = pl.pallas_call(
        _embedding_gather_kernel,
        out_shape=jax.ShapeDtypeStruct((T_pad, Dp), table.dtype),
        grid_spec=pltpu.PrefetchScalarGridSpec(
            num_scalar_prefetch=1,                       # ids -> SMEM
            grid=grid,
            in_specs=[pl.BlockSpec(memory_space=pl.ANY)],  # table stays in HBM
            out_specs=pl.BlockSpec((token_tile, Dp), lambda i, ids: (i, 0)),
            scratch_shapes=[
                pltpu.VMEM((token_tile, Dp), table.dtype),
                pltpu.SemaphoreType.DMA((token_tile,)),
            ],
        ),
        compiler_params=pltpu.CompilerParams(
            dimension_semantics=("parallel",),           # megacore-shardable
        ),
    )(ids_flat, table_p)

    return out_flat[:T, :D].reshape(B, S, D)


def make_embedding_params(vocab_size, em_dim, key):
    """Deterministic init matching nn.Embedding(vocab_size, em_dim, padding_idx=0):
    weights ~ N(0, 1), row 0 (padding_idx) zeroed."""
    w = jax.random.normal(key, (vocab_size, em_dim), dtype=jnp.float32)
    w = w.at[0].set(0.0)
    return w


if __name__ == "__main__":
    key = jax.random.PRNGKey(0)
    k_tab, k_ids = jax.random.split(key)

    vocab_size = 32
    em_dim = 32
    batch = 2
    seq = 8

    table = make_embedding_params(vocab_size, em_dim, k_tab)
    ids = jax.random.randint(k_ids, (batch, seq), minval=0, maxval=vocab_size,
                             dtype=jnp.int32)

    out = embedding_forward(ids, table)
    out = jax.block_until_ready(out)

    # sanity check against plain JAX gather semantics (exact copy -> exact match)
    ref = table[ids]
    assert out.shape == (batch, seq, em_dim)
    assert jnp.allclose(out, ref), "mismatch vs reference gather"

    # TODO(synk): out-of-range ids are not range-checked (PyTorch raises); inputs
    # are assumed to lie in [0, vocab_size).
    print("KERNEL_OK")
</pallas_src>

<mosaic_0001>
module attributes {stable_mosaic.version = 11 : i64} {
  func.func @_embedding_gather_kernel(%arg0: i32, %arg1: memref<16xi32, #tpu.memory_space<smem>>, %arg2: memref<32x128xf32, #tpu.memory_space<any>>, %arg3: memref<16x128xf32, #tpu.memory_space<vmem>>, %arg4: memref<16x128xf32, #tpu.memory_space<vmem>>, %arg5: memref<16x!tpu.dma_semaphore, #tpu.memory_space<semaphore_mem>>) attributes {dimension_semantics = [#tpu.dimension_semantics<parallel>], iteration_bounds = array<i64: 1>, scalar_prefetch = 1 : i64, scratch_operands = 2 : i64, tpu.core_type = #tpu.core_type<tc>, window_params = [{}, {transform_indices = @transform_1, window_bounds = array<i64: 16, 128>}]} {
    %c16_i32 = arith.constant 16 : i32
    %0 = arith.muli %arg0, %c16_i32 : i32
    %c0_i32 = arith.constant 0 : i32
    %1 = arith.addi %0, %c0_i32 : i32
    %2 = arith.index_cast %1 : i32 to index
    %3 = memref.load %arg1[%2] : memref<16xi32, #tpu.memory_space<smem>>
    %c0_i32_0 = arith.constant 0 : i32
    %c0_i32_1 = arith.constant 0 : i32
    %4 = tpu.memref_slice %arg2[%3, %c0_i32_1] : memref<32x128xf32, #tpu.memory_space<any>> -> memref<1x128xf32, #tpu.memory_space<any>>
    %c0_i32_2 = arith.constant 0 : i32
    %c0_i32_3 = arith.constant 0 : i32
    %5 = tpu.memref_slice %arg4[%c0_i32_2, %c0_i32_3] : memref<16x128xf32, #tpu.memory_space<vmem>> -> memref<1x128xf32, #tpu.memory_space<vmem>>
    %6 = tpu.memref_slice %arg5[%c0_i32_0] : memref<16x!tpu.dma_semaphore, #tpu.memory_space<semaphore_mem>> -> memref<1x!tpu.dma_semaphore, #tpu.memory_space<semaphore_mem>>
    %7 = tpu.memref_squeeze %6 : memref<1x!tpu.dma_semaphore, #tpu.memory_space<semaphore_mem>> -> memref<!tpu.dma_semaphore, #tpu.memory_space<semaphore_mem>>
    tpu.enqueue_dma source(%4 : memref<1x128xf32, #tpu.memory_space<any>>) target(%5 : memref<1x128xf32, #tpu.memory_space<vmem>>) target_semaphore(%7 : memref<!tpu.dma_semaphore, #tpu.memory_space<semaphore_mem>>)
    %c1_i32 = arith.constant 1 : i32
    %8 = arith.addi %0, %c1_i32 : i32
    %9 = arith.index_cast %8 : i32 to index
    %10 = memref.load %arg1[%9] : memref<16xi32, #tpu.memory_space<smem>>
    %c1_i32_4 = arith.constant 1 : i32
    %c0_i32_5 = arith.constant 0 : i32
    %11 = tpu.memref_slice %arg2[%10, %c0_i32_5] : memref<32x128xf32, #tpu.memory_space<any>> -> memref<1x128xf32, #tpu.memory_space<any>>
    %c1_i32_6 = arith.constant 1 : i32
    %c0_i32_7 = arith.constant 0 : i32
    %12 = tpu.memref_slice %arg4[%c1_i32_6, %c0_i32_7] : memref<16x128xf32, #tpu.memory_space<vmem>> -> memref<1x128xf32, #tpu.memory_space<vmem>>
    %13 = tpu.memref_slice %arg5[%c1_i32_4] : memref<16x!tpu.dma_semaphore, #tpu.memory_space<semaphore_mem>> -> memref<1x!tpu.dma_semaphore, #tpu.memory_space<semaphore_mem>>
    %14 = tpu.memref_squeeze %13 : memref<1x!tpu.dma_semaphore, #tpu.memory_space<semaphore_mem>> -> memref<!tpu.dma_semaphore, #tpu.memory_space<semaphore_mem>>
    tpu.enqueue_dma source(%11 : memref<1x128xf32, #tpu.memory_space<any>>) target(%12 : memref<1x128xf32, #tpu.memory_space<vmem>>) target_semaphore(%14 : memref<!tpu.dma_semaphore, #tpu.memory_space<semaphore_mem>>)
    %c2_i32 = arith.constant 2 : i32
    %15 = arith.addi %0, %c2_i32 : i32
    %16 = arith.index_cast %15 : i32 to index
    %17 = memref.load %arg1[%16] : memref<16xi32, #tpu.memory_space<smem>>
    %c2_i32_8 = arith.constant 2 : i32
    %c0_i32_9 = arith.constant 0 : i32
    %18 = tpu.memref_slice %arg2[%17, %c0_i32_9] : memref<32x128xf32, #tpu.memory_space<any>> -> memref<1x128xf32, #tpu.memory_space<any>>
    %c2_i32_10 = arith.constant 2 : i32
    %c0_i32_11 = arith.constant 0 : i32
    %19 = tpu.memref_slice %arg4[%c2_i32_10, %c0_i32_11] : memref<16x128xf32, #tpu.memory_space<vmem>> -> memref<1x128xf32, #tpu.memory_space<vmem>>
    %20 = tpu.memref_slice %arg5[%c2_i32_8] : memref<16x!tpu.dma_semaphore, #tpu.memory_space<semaphore_mem>> -> memref<1x!tpu.dma_semaphore, #tpu.memory_space<semaphore_mem>>
    %21 = tpu.memref_squeeze %20 : memref<1x!tpu.dma_semaphore, #tpu.memory_space<semaphore_mem>> -> memref<!tpu.dma_semaphore, #tpu.memory_space<semaphore_mem>>
    tpu.enqueue_dma source(%18 : memref<1x128xf32, #tpu.memory_space<any>>) target(%19 : memref<1x128xf32, #tpu.memory_space<vmem>>) target_semaphore(%21 : memref<!tpu.dma_semaphore, #tpu.memory_space<semaphore_mem>>)
    %c3_i32 = arith.constant 3 : i32
    %22 = arith.addi %0, %c3_i32 : i32
    %23 = arith.index_cast %22 : i32 to index
    %24 = memref.load %arg1[%23] : memref<16xi32, #tpu.memory_space<smem>>
    %c3_i32_12 = arith.constant 3 : i32
    %c0_i32_13 = arith.constant 0 : i32
    %25 = tpu.memref_slice %arg2[%24, %c0_i32_13] : memref<32x128xf32, #tpu.memory_space<any>> -> memref<1x128xf32, #tpu.memory_space<any>>
    %c3_i32_14 = arith.constant 3 : i32
    %c0_i32_15 = arith.constant 0 : i32
    %26 = tpu.memref_slice %arg4[%c3_i32_14, %c0_i32_15] : memref<16x128xf32, #tpu.memory_space<vmem>> -> memref<1x128xf32, #tpu.memory_space<vmem>>
    %27 = tpu.memref_slice %arg5[%c3_i32_12] : memref<16x!tpu.dma_semaphore, #tpu.memory_space<semaphore_mem>> -> memref<1x!tpu.dma_semaphore, #tpu.memory_space<semaphore_mem>>
    %28 = tpu.memref_squeeze %27 : memref<1x!tpu.dma_semaphore, #tpu.memory_space<semaphore_mem>> -> memref<!tpu.dma_semaphore, #tpu.memory_space<semaphore_mem>>
    tpu.enqueue_dma source(%25 : memref<1x128xf32, #tpu.memory_space<any>>) target(%26 : memref<1x128xf32, #tpu.memory_space<vmem>>) target_semaphore(%28 : memref<!tpu.dma_semaphore, #tpu.memory_space<semaphore_mem>>)
    %c4_i32 = arith.constant 4 : i32
    %29 = arith.addi %0, %c4_i32 : i32
    %30 = arith.index_cast %29 : i32 to index
    %31 = memref.load %arg1[%30] : memref<16xi32, #tpu.memory_space<smem>>
    %c4_i32_16 = arith.constant 4 : i32
    %c0_i32_17 = arith.constant 0 : i32
    %32 = tpu.memref_slice %arg2[%31, %c0_i32_17] : memref<32x128xf32, #tpu.memory_space<any>> -> memref<1x128xf32, #tpu.memory_space<any>>
    %c4_i32_18 = arith.constant 4 : i32
    %c0_i32_19 = arith.constant 0 : i32
    %33 = tpu.memref_slice %arg4[%c4_i32_18, %c0_i32_19] : memref<16x128xf32, #tpu.memory_space<vmem>> -> memref<1x128xf32, #tpu.memory_space<vmem>>
    %34 = tpu.memref_slice %arg5[%c4_i32_16] : memref<16x!tpu.dma_semaphore, #tpu.memory_space<semaphore_mem>> -> memref<1x!tpu.dma_semaphore, #tpu.memory_space<semaphore_mem>>
    %35 = tpu.memref_squeeze %34 : memref<1x!tpu.dma_semaphore, #tpu.memory_space<semaphore_mem>> -> memref<!tpu.dma_semaphore, #tpu.memory_space<semaphore_mem>>
    tpu.enqueue_dma source(%32 : memref<1x128xf32, #tpu.memory_space<any>>) target(%33 : memref<1x128xf32, #tpu.memory_space<vmem>>) target_semaphore(%35 : memref<!tpu.dma_semaphore, #tpu.memory_space<semaphore_mem>>)
    %c5_i32 = arith.constant 5 : i32
    %36 = arith.addi %0, %c5_i32 : i32
    %37 = arith.index_cast %36 : i32 to index
    %38 = memref.load %arg1[%37] : memref<16xi32, #tpu.memory_space<smem>>
    %c5_i32_20 = arith.constant 5 : i32
    %c0_i32_21 = arith.constant 0 : i32
    %39 = tpu.memref_slice %arg2[%38, %c0_i32_21] : memref<32x128xf32, #tpu.memory_space<any>> -> memref<1x128xf32, #tpu.memory_space<any>>
    %c5_i32_22 = arith.constant 5 : i32
    %c0_i32_23 = arith.constant 0 : i32
    %40 = tpu.memref_slice %arg4[%c5_i32_22, %c0_i32_23] : memref<16x128xf32, #tpu.memory_space<vmem>> -> memref<1x128xf32, #tpu.memory_space<vmem>>
    %41 = tpu.memref_slice %arg5[%c5_i32_20] : memref<16x!tpu.dma_semaphore, #tpu.memory_space<semaphore_mem>> -> memref<1x!tpu.dma_semaphore, #tpu.memory_space<semaphore_mem>>
    %42 = tpu.memref_squeeze %41 : memref<1x!tpu.dma_semaphore, #tpu.memory_space<semaphore_mem>> -> memref<!tpu.dma_semaphore, #tpu.memory_space<semaphore_mem>>
    tpu.enqueue_dma source(%39 : memref<1x128xf32, #tpu.memory_space<any>>) target(%40 : memref<1x128xf32, #tpu.memory_space<vmem>>) target_semaphore(%42 : memref<!tpu.dma_semaphore, #tpu.memory_space<semaphore_mem>>)
    %c6_i32 = arith.constant 6 : i32
    %43 = arith.addi %0, %c6_i32 : i32
    %44 = arith.index_cast %43 : i32 to index
    %45 = memref.load %arg1[%44] : memref<16xi32, #tpu.memory_space<smem>>
    %c6_i32_24 = arith.constant 6 : i32
    %c0_i32_25 = arith.constant 0 : i32
    %46 = tpu.memref_slice %arg2[%45, %c0_i32_25] : memref<32x128xf32, #tpu.memory_space<any>> -> memref<1x128xf32, #tpu.memory_space<any>>
    %c6_i32_26 = arith.constant 6 : i32
    %c0_i32_27 = arith.constant 0 : i32
    %47 = tpu.memref_slice %arg4[%c6_i32_26, %c0_i32_27] : memref<16x128xf32, #tpu.memory_space<vmem>> -> memref<1x128xf32, #tpu.memory_space<vmem>>
    %48 = tpu.memref_slice %arg5[%c6_i32_24] : memref<16x!tpu.dma_semaphore, #tpu.memory_space<semaphore_mem>> -> memref<1x!tpu.dma_semaphore, #tpu.memory_space<semaphore_mem>>
    %49 = tpu.memref_squeeze %48 : memref<1x!tpu.dma_semaphore, #tpu.memory_space<semaphore_mem>> -> memref<!tpu.dma_semaphore, #tpu.memory_space<semaphore_mem>>
    tpu.enqueue_dma source(%46 : memref<1x128xf32, #tpu.memory_space<any>>) target(%47 : memref<1x128xf32, #tpu.memory_space<vmem>>) target_semaphore(%49 : memref<!tpu.dma_semaphore, #tpu.memory_space<semaphore_mem>>)
    %c7_i32 = arith.constant 7 : i32
    %50 = arith.addi %0, %c7_i32 : i32
    %51 = arith.index_cast %50 : i32 to index
    %52 = memref.load %arg1[%51] : memref<16xi32, #tpu.memory_space<smem>>
    %c7_i32_28 = arith.constant 7 : i32
    %c0_i32_29 = arith.constant 0 : i32
    %53 = tpu.memref_slice %arg2[%52, %c0_i32_29] : memref<32x128xf32, #tpu.memory_space<any>> -> memref<1x128xf32, #tpu.memory_space<any>>
    %c7_i32_30 = arith.constant 7 : i32
    %c0_i32_31 = arith.constant 0 : i32
    %54 = tpu.memref_slice %arg4[%c7_i32_30, %c0_i32_31] : memref<16x128xf32, #tpu.memory_space<vmem>> -> memref<1x128xf32, #tpu.memory_space<vmem>>
    %55 = tpu.memref_slice %arg5[%c7_i32_28] : memref<16x!tpu.dma_semaphore, #tpu.memory_space<semaphore_mem>> -> memref<1x!tpu.dma_semaphore, #tpu.memory_space<semaphore_mem>>
    %56 = tpu.memref_squeeze %55 : memref<1x!tpu.dma_semaphore, #tpu.memory_space<semaphore_mem>> -> memref<!tpu.dma_semaphore, #tpu.memory_space<semaphore_mem>>
    tpu.enqueue_dma source(%53 : memref<1x128xf32, #tpu.memory_space<any>>) target(%54 : memref<1x128xf32, #tpu.memory_space<vmem>>) target_semaphore(%56 : memref<!tpu.dma_semaphore, #tpu.memory_space<semaphore_mem>>)
    %c8_i32 = arith.constant 8 : i32
    %57 = arith.addi %0, %c8_i32 : i32
    %58 = arith.index_cast %57 : i32 to index
    %59 = memref.load %arg1[%58] : memref<16xi32, #tpu.memory_space<smem>>
    %c8_i32_32 = arith.constant 8 : i32
    %c0_i32_33 = arith.constant 0 : i32
    %60 = tpu.memref_slice %arg2[%59, %c0_i32_33] : memref<32x128xf32, #tpu.memory_space<any>> -> memref<1x128xf32, #tpu.memory_space<any>>
    %c8_i32_34 = arith.constant 8 : i32
    %c0_i32_35 = arith.constant 0 : i32
    %61 = tpu.memref_slice %arg4[%c8_i32_34, %c0_i32_35] : memref<16x128xf32, #tpu.memory_space<vmem>> -> memref<1x128xf32, #tpu.memory_space<vmem>>
    %62 = tpu.memref_slice %arg5[%c8_i32_32] : memref<16x!tpu.dma_semaphore, #tpu.memory_space<semaphore_mem>> -> memref<1x!tpu.dma_semaphore, #tpu.memory_space<semaphore_mem>>
    %63 = tpu.memref_squeeze %62 : memref<1x!tpu.dma_semaphore, #tpu.memory_space<semaphore_mem>> -> memref<!tpu.dma_semaphore, #tpu.memory_space<semaphore_mem>>
    tpu.enqueue_dma source(%60 : memref<1x128xf32, #tpu.memory_space<any>>) target(%61 : memref<1x128xf32, #tpu.memory_space<vmem>>) target_semaphore(%63 : memref<!tpu.dma_semaphore, #tpu.memory_space<semaphore_mem>>)
    %c9_i32 = arith.constant 9 : i32
    %64 = arith.addi %0, %c9_i32 : i32
    %65 = arith.index_cast %64 : i32 to index
    %66 = memref.load %arg1[%65] : memref<16xi32, #tpu.memory_space<smem>>
    %c9_i32_36 = arith.constant 9 : i32
    %c0_i32_37 = arith.constant 0 : i32
    %67 = tpu.memref_slice %arg2[%66, %c0_i32_37] : memref<32x128xf32, #tpu.memory_space<any>> -> memref<1x128xf32, #tpu.memory_space<any>>
    %c9_i32_38 = arith.constant 9 : i32
    %c0_i32_39 = arith.constant 0 : i32
    %68 = tpu.memref_slice %arg4[%c9_i32_38, %c0_i32_39] : memref<16x128xf32, #tpu.memory_space<vmem>> -> memref<1x128xf32, #tpu.memory_space<vmem>>
    %69 = tpu.memref_slice %arg5[%c9_i32_36] : memref<16x!tpu.dma_semaphore, #tpu.memory_space<semaphore_mem>> -> memref<1x!tpu.dma_semaphore, #tpu.memory_space<semaphore_mem>>
    %70 = tpu.memref_squeeze %69 : memref<1x!tpu.dma_semaphore, #tpu.memory_space<semaphore_mem>> -> memref<!tpu.dma_semaphore, #tpu.memory_space<semaphore_mem>>
    tpu.enqueue_dma source(%67 : memref<1x128xf32, #tpu.memory_space<any>>) target(%68 : memref<1x128xf32, #tpu.memory_space<vmem>>) target_semaphore(%70 : memref<!tpu.dma_semaphore, #tpu.memory_space<semaphore_mem>>)
    %c10_i32 = arith.constant 10 : i32
    %71 = arith.addi %0, %c10_i32 : i32
    %72 = arith.index_cast %71 : i32 to index
    %73 = memref.load %arg1[%72] : memref<16xi32, #tpu.memory_space<smem>>
    %c10_i32_40 = arith.constant 10 : i32
    %c0_i32_41 = arith.constant 0 : i32
    %74 = tpu.memref_slice %arg2[%73, %c0_i32_41] : memref<32x128xf32, #tpu.memory_space<any>> -> memref<1x128xf32, #tpu.memory_space<any>>
    %c10_i32_42 = arith.constant 10 : i32
    %c0_i32_43 = arith.constant 0 : i32
    %75 = tpu.memref_slice %arg4[%c10_i32_42, %c0_i32_43] : memref<16x128xf32, #tpu.memory_space<vmem>> -> memref<1x128xf32, #tpu.memory_space<vmem>>
    %76 = tpu.memref_slice %arg5[%c10_i32_40] : memref<16x!tpu.dma_semaphore, #tpu.memory_space<semaphore_mem>> -> memref<1x!tpu.dma_semaphore, #tpu.memory_space<semaphore_mem>>
    %77 = tpu.memref_squeeze %76 : memref<1x!tpu.dma_semaphore, #tpu.memory_space<semaphore_mem>> -> memref<!tpu.dma_semaphore, #tpu.memory_space<semaphore_mem>>
    tpu.enqueue_dma source(%74 : memref<1x128xf32, #tpu.memory_space<any>>) target(%75 : memref<1x128xf32, #tpu.memory_space<vmem>>) target_semaphore(%77 : memref<!tpu.dma_semaphore, #tpu.memory_space<semaphore_mem>>)
    %c11_i32 = arith.constant 11 : i32
    %78 = arith.addi %0, %c11_i32 : i32
    %79 = arith.index_cast %78 : i32 to index
    %80 = memref.load %arg1[%79] : memref<16xi32, #tpu.memory_space<smem>>
    %c11_i32_44 = arith.constant 11 : i32
    %c0_i32_45 = arith.constant 0 : i32
    %81 = tpu.memref_slice %arg2[%80, %c0_i32_45] : memref<32x128xf32, #tpu.memory_space<any>> -> memref<1x128xf32, #tpu.memory_space<any>>
    %c11_i32_46 = arith.constant 11 : i32
    %c0_i32_47 = arith.constant 0 : i32
    %82 = tpu.memref_slice %arg4[%c11_i32_46, %c0_i32_47] : memref<16x128xf32, #tpu.memory_space<vmem>> -> memref<1x128xf32, #tpu.memory_space<vmem>>
    %83 = tpu.memref_slice %arg5[%c11_i32_44] : memref<16x!tpu.dma_semaphore, #tpu.memory_space<semaphore_mem>> -> memref<1x!tpu.dma_semaphore, #tpu.memory_space<semaphore_mem>>
    %84 = tpu.memref_squeeze %83 : memref<1x!tpu.dma_semaphore, #tpu.memory_space<semaphore_mem>> -> memref<!tpu.dma_semaphore, #tpu.memory_space<semaphore_mem>>
    tpu.enqueue_dma source(%81 : memref<1x128xf32, #tpu.memory_space<any>>) target(%82 : memref<1x128xf32, #tpu.memory_space<vmem>>) target_semaphore(%84 : memref<!tpu.dma_semaphore, #tpu.memory_space<semaphore_mem>>)
    %c12_i32 = arith.constant 12 : i32
    %85 = arith.addi %0, %c12_i32 : i32
    %86 = arith.index_cast %85 : i32 to index
    %87 = memref.load %arg1[%86] : memref<16xi32, #tpu.memory_space<smem>>
    %c12_i32_48 = arith.constant 12 : i32
    %c0_i32_49 = arith.constant 0 : i32
    %88 = tpu.memref_slice %arg2[%87, %c0_i32_49] : memref<32x128xf32, #tpu.memory_space<any>> -> memref<1x128xf32, #tpu.memory_space<any>>
    %c12_i32_50 = arith.constant 12 : i32
    %c0_i32_51 = arith.constant 0 : i32
    %89 = tpu.memref_slice %arg4[%c12_i32_50, %c0_i32_51] : memref<16x128xf32, #tpu.memory_space<vmem>> -> memref<1x128xf32, #tpu.memory_space<vmem>>
    %90 = tpu.memref_slice %arg5[%c12_i32_48] : memref<16x!tpu.dma_semaphore, #tpu.memory_space<semaphore_mem>> -> memref<1x!tpu.dma_semaphore, #tpu.memory_space<semaphore_mem>>
    %91 = tpu.memref_squeeze %90 : memref<1x!tpu.dma_semaphore, #tpu.memory_space<semaphore_mem>> -> memref<!tpu.dma_semaphore, #tpu.memory_space<semaphore_mem>>
    tpu.enqueue_dma source(%88 : memref<1x128xf32, #tpu.memory_space<any>>) target(%89 : memref<1x128xf32, #tpu.memory_space<vmem>>) target_semaphore(%91 : memref<!tpu.dma_semaphore, #tpu.memory_space<semaphore_mem>>)
    %c13_i32 = arith.constant 13 : i32
    %92 = arith.addi %0, %c13_i32 : i32
    %93 = arith.index_cast %92 : i32 to index
    %94 = memref.load %arg1[%93] : memref<16xi32, #tpu.memory_space<smem>>
    %c13_i32_52 = arith.constant 13 : i32
    %c0_i32_53 = arith.constant 0 : i32
    %95 = tpu.memref_slice %arg2[%94, %c0_i32_53] : memref<32x128xf32, #tpu.memory_space<any>> -> memref<1x128xf32, #tpu.memory_space<any>>
    %c13_i32_54 = arith.constant 13 : i32
    %c0_i32_55 = arith.constant 0 : i32
    %96 = tpu.memref_slice %arg4[%c13_i32_54, %c0_i32_55] : memref<16x128xf32, #tpu.memory_space<vmem>> -> memref<1x128xf32, #tpu.memory_space<vmem>>
    %97 = tpu.memref_slice %arg5[%c13_i32_52] : memref<16x!tpu.dma_semaphore, #tpu.memory_space<semaphore_mem>> -> memref<1x!tpu.dma_semaphore, #tpu.memory_space<semaphore_mem>>
    %98 = tpu.memref_squeeze %97 : memref<1x!tpu.dma_semaphore, #tpu.memory_space<semaphore_mem>> -> memref<!tpu.dma_semaphore, #tpu.memory_space<semaphore_mem>>
    tpu.enqueue_dma source(%95 : memref<1x128xf32, #tpu.memory_space<any>>) target(%96 : memref<1x128xf32, #tpu.memory_space<vmem>>) target_semaphore(%98 : memref<!tpu.dma_semaphore, #tpu.memory_space<semaphore_mem>>)
    %c14_i32 = arith.constant 14 : i32
    %99 = arith.addi %0, %c14_i32 : i32
    %100 = arith.index_cast %99 : i32 to index
    %101 = memref.load %arg1[%100] : memref<16xi32, #tpu.memory_space<smem>>
    %c14_i32_56 = arith.constant 14 : i32
    %c0_i32_57 = arith.constant 0 : i32
    %102 = tpu.memref_slice %arg2[%101, %c0_i32_57] : memref<32x128xf32, #tpu.memory_space<any>> -> memref<1x128xf32, #tpu.memory_space<any>>
    %c14_i32_58 = arith.constant 14 : i32
    %c0_i32_59 = arith.constant 0 : i32
    %103 = tpu.memref_slice %arg4[%c14_i32_58, %c0_i32_59] : memref<16x128xf32, #tpu.memory_space<vmem>> -> memref<1x128xf32, #tpu.memory_space<vmem>>
    %104 = tpu.memref_slice %arg5[%c14_i32_56] : memref<16x!tpu.dma_semaphore, #tpu.memory_space<semaphore_mem>> -> memref<1x!tpu.dma_semaphore, #tpu.memory_space<semaphore_mem>>
    %105 = tpu.memref_squeeze %104 : memref<1x!tpu.dma_semaphore, #tpu.memory_space<semaphore_mem>> -> memref<!tpu.dma_semaphore, #tpu.memory_space<semaphore_mem>>
    tpu.enqueue_dma source(%102 : memref<1x128xf32, #tpu.memory_space<any>>) target(%103 : memref<1x128xf32, #tpu.memory_space<vmem>>) target_semaphore(%105 : memref<!tpu.dma_semaphore, #tpu.memory_space<semaphore_mem>>)
    %c15_i32 = arith.constant 15 : i32
    %106 = arith.addi %0, %c15_i32 : i32
    %107 = arith.index_cast %106 : i32 to index
    %108 = memref.load %arg1[%107] : memref<16xi32, #tpu.memory_space<smem>>
    %c15_i32_60 = arith.constant 15 : i32
    %c0_i32_61 = arith.constant 0 : i32
    %109 = tpu.memref_slice %arg2[%108, %c0_i32_61] : memref<32x128xf32, #tpu.memory_space<any>> -> memref<1x128xf32, #tpu.memory_space<any>>
    %c15_i32_62 = arith.constant 15 : i32
    %c0_i32_63 = arith.constant 0 : i32
    %110 = tpu.memref_slice %arg4[%c15_i32_62, %c0_i32_63] : memref<16x128xf32, #tpu.memory_space<vmem>> -> memref<1x128xf32, #tpu.memory_space<vmem>>
    %111 = tpu.memref_slice %arg5[%c15_i32_60] : memref<16x!tpu.dma_semaphore, #tpu.memory_space<semaphore_mem>> -> memref<1x!tpu.dma_semaphore, #tpu.memory_space<semaphore_mem>>
    %112 = tpu.memref_squeeze %111 : memref<1x!tpu.dma_semaphore, #tpu.memory_space<semaphore_mem>> -> memref<!tpu.dma_semaphore, #tpu.memory_space<semaphore_mem>>
    tpu.enqueue_dma source(%109 : memref<1x128xf32, #tpu.memory_space<any>>) target(%110 : memref<1x128xf32, #tpu.memory_space<vmem>>) target_semaphore(%112 : memref<!tpu.dma_semaphore, #tpu.memory_space<semaphore_mem>>)
    %c0_i32_64 = arith.constant 0 : i32
    %c0_i32_65 = arith.constant 0 : i32
    %113 = tpu.memref_slice %arg2[%3, %c0_i32_65] : memref<32x128xf32, #tpu.memory_space<any>> -> memref<1x128xf32, #tpu.memory_space<any>>
    %c0_i32_66 = arith.constant 0 : i32
    %c0_i32_67 = arith.constant 0 : i32
    %114 = tpu.memref_slice %arg4[%c0_i32_66, %c0_i32_67] : memref<16x128xf32, #tpu.memory_space<vmem>> -> memref<1x128xf32, #tpu.memory_space<vmem>>
    %115 = tpu.memref_slice %arg5[%c0_i32_64] : memref<16x!tpu.dma_semaphore, #tpu.memory_space<semaphore_mem>> -> memref<1x!tpu.dma_semaphore, #tpu.memory_space<semaphore_mem>>
    %116 = tpu.memref_squeeze %115 : memref<1x!tpu.dma_semaphore, #tpu.memory_space<semaphore_mem>> -> memref<!tpu.dma_semaphore, #tpu.memory_space<semaphore_mem>>
    tpu.wait_dma2 semaphore(%116 : memref<!tpu.dma_semaphore, #tpu.memory_space<semaphore_mem>>) src(%113 : memref<1x128xf32, #tpu.memory_space<any>>) dst(%114 : memref<1x128xf32, #tpu.memory_space<vmem>>)
    %c1_i32_68 = arith.constant 1 : i32
    %c0_i32_69 = arith.constant 0 : i32
    %117 = tpu.memref_slice %arg2[%10, %c0_i32_69] : memref<32x128xf32, #tpu.memory_space<any>> -> memref<1x128xf32, #tpu.memory_space<any>>
    %c1_i32_70 = arith.constant 1 : i32
    %c0_i32_71 = arith.constant 0 : i32
    %118 = tpu.memref_slice %arg4[%c1_i32_70, %c0_i32_71] : memref<16x128xf32, #tpu.memory_space<vmem>> -> memref<1x128xf32, #tpu.memory_space<vmem>>
    %119 = tpu.memref_slice %arg5[%c1_i32_68] : memref<16x!tpu.dma_semaphore, #tpu.memory_space<semaphore_mem>> -> memref<1x!tpu.dma_semaphore, #tpu.memory_space<semaphore_mem>>
    %120 = tpu.memref_squeeze %119 : memref<1x!tpu.dma_semaphore, #tpu.memory_space<semaphore_mem>> -> memref<!tpu.dma_semaphore, #tpu.memory_space<semaphore_mem>>
    tpu.wait_dma2 semaphore(%120 : memref<!tpu.dma_semaphore, #tpu.memory_space<semaphore_mem>>) src(%117 : memref<1x128xf32, #tpu.memory_space<any>>) dst(%118 : memref<1x128xf32, #tpu.memory_space<vmem>>)
    %c2_i32_72 = arith.constant 2 : i32
    %c0_i32_73 = arith.constant 0 : i32
    %121 = tpu.memref_slice %arg2[%17, %c0_i32_73] : memref<32x128xf32, #tpu.memory_space<any>> -> memref<1x128xf32, #tpu.memory_space<any>>
    %c2_i32_74 = arith.constant 2 : i32
    %c0_i32_75 = arith.constant 0 : i32
    %122 = tpu.memref_slice %arg4[%c2_i32_74, %c0_i32_75] : memref<16x128xf32, #tpu.memory_space<vmem>> -> memref<1x128xf32, #tpu.memory_space<vmem>>
    %123 = tpu.memref_slice %arg5[%c2_i32_72] : memref<16x!tpu.dma_semaphore, #tpu.memory_space<semaphore_mem>> -> memref<1x!tpu.dma_semaphore, #tpu.memory_space<semaphore_mem>>
    %124 = tpu.memref_squeeze %123 : memref<1x!tpu.dma_semaphore, #tpu.memory_space<semaphore_mem>> -> memref<!tpu.dma_semaphore, #tpu.memory_space<semaphore_mem>>
    tpu.wait_dma2 semaphore(%124 : memref<!tpu.dma_semaphore, #tpu.memory_space<semaphore_mem>>) src(%121 : memref<1x128xf32, #tpu.memory_space<any>>) dst(%122 : memref<1x128xf32, #tpu.memory_space<vmem>>)
    %c3_i32_76 = arith.constant 3 : i32
    %c0_i32_77 = arith.constant 0 : i32
    %125 = tpu.memref_slice %arg2[%24, %c0_i32_77] : memref<32x128xf32, #tpu.memory_space<any>> -> memref<1x128xf32, #tpu.memory_space<any>>
    %c3_i32_78 = arith.constant 3 : i32
    %c0_i32_79 = arith.constant 0 : i32
    %126 = tpu.memref_slice %arg4[%c3_i32_78, %c0_i32_79] : memref<16x128xf32, #tpu.memory_space<vmem>> -> memref<1x128xf32, #tpu.memory_space<vmem>>
    %127 = tpu.memref_slice %arg5[%c3_i32_76] : memref<16x!tpu.dma_semaphore, #tpu.memory_space<semaphore_mem>> -> memref<1x!tpu.dma_semaphore, #tpu.memory_space<semaphore_mem>>
    %128 = tpu.memref_squeeze %127 : memref<1x!tpu.dma_semaphore, #tpu.memory_space<semaphore_mem>> -> memref<!tpu.dma_semaphore, #tpu.memory_space<semaphore_mem>>
    tpu.wait_dma2 semaphore(%128 : memref<!tpu.dma_semaphore, #tpu.memory_space<semaphore_mem>>) src(%125 : memref<1x128xf32, #tpu.memory_space<any>>) dst(%126 : memref<1x128xf32, #tpu.memory_space<vmem>>)
    %c4_i32_80 = arith.constant 4 : i32
    %c0_i32_81 = arith.constant 0 : i32
    %129 = tpu.memref_slice %arg2[%31, %c0_i32_81] : memref<32x128xf32, #tpu.memory_space<any>> -> memref<1x128xf32, #tpu.memory_space<any>>
    %c4_i32_82 = arith.constant 4 : i32
    %c0_i32_83 = arith.constant 0 : i32
    %130 = tpu.memref_slice %arg4[%c4_i32_82, %c0_i32_83] : memref<16x128xf32, #tpu.memory_space<vmem>> -> memref<1x128xf32, #tpu.memory_space<vmem>>
    %131 = tpu.memref_slice %arg5[%c4_i32_80] : memref<16x!tpu.dma_semaphore, #tpu.memory_space<semaphore_mem>> -> memref<1x!tpu.dma_semaphore, #tpu.memory_space<semaphore_mem>>
    %132 = tpu.memref_squeeze %131 : memref<1x!tpu.dma_semaphore, #tpu.memory_space<semaphore_mem>> -> memref<!tpu.dma_semaphore, #tpu.memory_space<semaphore_mem>>
    tpu.wait_dma2 semaphore(%132 : memref<!tpu.dma_semaphore, #tpu.memory_space<semaphore_mem>>) src(%129 : memref<1x128xf32, #tpu.memory_space<any>>) dst(%130 : memref<1x128xf32, #tpu.memory_space<vmem>>)
    %c5_i32_84 = arith.constant 5 : i32
    %c0_i32_85 = arith.constant 0 : i32
    %133 = tpu.memref_slice %arg2[%38, %c0_i32_85] : memref<32x128xf32, #tpu.memory_space<any>> -> memref<1x128xf32, #tpu.memory_space<any>>
    %c5_i32_86 = arith.constant 5 : i32
    %c0_i32_87 = arith.constant 0 : i32
    %134 = tpu.memref_slice %arg4[%c5_i32_86, %c0_i32_87] : memref<16x128xf32, #tpu.memory_space<vmem>> -> memref<1x128xf32, #tpu.memory_space<vmem>>
    %135 = tpu.memref_slice %arg5[%c5_i32_84] : memref<16x!tpu.dma_semaphore, #tpu.memory_space<semaphore_mem>> -> memref<1x!tpu.dma_semaphore, #tpu.memory_space<semaphore_mem>>
    %136 = tpu.memref_squeeze %135 : memref<1x!tpu.dma_semaphore, #tpu.memory_space<semaphore_mem>> -> memref<!tpu.dma_semaphore, #tpu.memory_space<semaphore_mem>>
    tpu.wait_dma2 semaphore(%136 : memref<!tpu.dma_semaphore, #tpu.memory_space<semaphore_mem>>) src(%133 : memref<1x128xf32, #tpu.memory_space<any>>) dst(%134 : memref<1x128xf32, #tpu.memory_space<vmem>>)
    %c6_i32_88 = arith.constant 6 : i32
    %c0_i32_89 = arith.constant 0 : i32
    %137 = tpu.memref_slice %arg2[%45, %c0_i32_89] : memref<32x128xf32, #tpu.memory_space<any>> -> memref<1x128xf32, #tpu.memory_space<any>>
    %c6_i32_90 = arith.constant 6 : i32
    %c0_i32_91 = arith.constant 0 : i32
    %138 = tpu.memref_slice %arg4[%c6_i32_90, %c0_i32_91] : memref<16x128xf32, #tpu.memory_space<vmem>> -> memref<1x128xf32, #tpu.memory_space<vmem>>
    %139 = tpu.memref_slice %arg5[%c6_i32_88] : memref<16x!tpu.dma_semaphore, #tpu.memory_space<semaphore_mem>> -> memref<1x!tpu.dma_semaphore, #tpu.memory_space<semaphore_mem>>
    %140 = tpu.memref_squeeze %139 : memref<1x!tpu.dma_semaphore, #tpu.memory_space<semaphore_mem>> -> memref<!tpu.dma_semaphore, #tpu.memory_space<semaphore_mem>>
    tpu.wait_dma2 semaphore(%140 : memref<!tpu.dma_semaphore, #tpu.memory_space<semaphore_mem>>) src(%137 : memref<1x128xf32, #tpu.memory_space<any>>) dst(%138 : memref<1x128xf32, #tpu.memory_space<vmem>>)
    %c7_i32_92 = arith.constant 7 : i32
    %c0_i32_93 = arith.constant 0 : i32
    %141 = tpu.memref_slice %arg2[%52, %c0_i32_93] : memref<32x128xf32, #tpu.memory_space<any>> -> memref<1x128xf32, #tpu.memory_space<any>>
    %c7_i32_94 = arith.constant 7 : i32
    %c0_i32_95 = arith.constant 0 : i32
    %142 = tpu.memref_slice %arg4[%c7_i32_94, %c0_i32_95] : memref<16x128xf32, #tpu.memory_space<vmem>> -> memref<1x128xf32, #tpu.memory_space<vmem>>
    %143 = tpu.memref_slice %arg5[%c7_i32_92] : memref<16x!tpu.dma_semaphore, #tpu.memory_space<semaphore_mem>> -> memref<1x!tpu.dma_semaphore, #tpu.memory_space<semaphore_mem>>
    %144 = tpu.memref_squeeze %143 : memref<1x!tpu.dma_semaphore, #tpu.memory_space<semaphore_mem>> -> memref<!tpu.dma_semaphore, #tpu.memory_space<semaphore_mem>>
    tpu.wait_dma2 semaphore(%144 : memref<!tpu.dma_semaphore, #tpu.memory_space<semaphore_mem>>) src(%141 : memref<1x128xf32, #tpu.memory_space<any>>) dst(%142 : memref<1x128xf32, #tpu.memory_space<vmem>>)
    %c8_i32_96 = arith.constant 8 : i32
    %c0_i32_97 = arith.constant 0 : i32
    %145 = tpu.memref_slice %arg2[%59, %c0_i32_97] : memref<32x128xf32, #tpu.memory_space<any>> -> memref<1x128xf32, #tpu.memory_space<any>>
    %c8_i32_98 = arith.constant 8 : i32
    %c0_i32_99 = arith.constant 0 : i32
    %146 = tpu.memref_slice %arg4[%c8_i32_98, %c0_i32_99] : memref<16x128xf32, #tpu.memory_space<vmem>> -> memref<1x128xf32, #tpu.memory_space<vmem>>
    %147 = tpu.memref_slice %arg5[%c8_i32_96] : memref<16x!tpu.dma_semaphore, #tpu.memory_space<semaphore_mem>> -> memref<1x!tpu.dma_semaphore, #tpu.memory_space<semaphore_mem>>
    %148 = tpu.memref_squeeze %147 : memref<1x!tpu.dma_semaphore, #tpu.memory_space<semaphore_mem>> -> memref<!tpu.dma_semaphore, #tpu.memory_space<semaphore_mem>>
    tpu.wait_dma2 semaphore(%148 : memref<!tpu.dma_semaphore, #tpu.memory_space<semaphore_mem>>) src(%145 : memref<1x128xf32, #tpu.memory_space<any>>) dst(%146 : memref<1x128xf32, #tpu.memory_space<vmem>>)
    %c9_i32_100 = arith.constant 9 : i32
    %c0_i32_101 = arith.constant 0 : i32
    %149 = tpu.memref_slice %arg2[%66, %c0_i32_101] : memref<32x128xf32, #tpu.memory_space<any>> -> memref<1x128xf32, #tpu.memory_space<any>>
    %c9_i32_102 = arith.constant 9 : i32
    %c0_i32_103 = arith.constant 0 : i32
    %150 = tpu.memref_slice %arg4[%c9_i32_102, %c0_i32_103] : memref<16x128xf32, #tpu.memory_space<vmem>> -> memref<1x128xf32, #tpu.memory_space<vmem>>
    %151 = tpu.memref_slice %arg5[%c9_i32_100] : memref<16x!tpu.dma_semaphore, #tpu.memory_space<semaphore_mem>> -> memref<1x!tpu.dma_semaphore, #tpu.memory_space<semaphore_mem>>
    %152 = tpu.memref_squeeze %151 : memref<1x!tpu.dma_semaphore, #tpu.memory_space<semaphore_mem>> -> memref<!tpu.dma_semaphore, #tpu.memory_space<semaphore_mem>>
    tpu.wait_dma2 semaphore(%152 : memref<!tpu.dma_semaphore, #tpu.memory_space<semaphore_mem>>) src(%149 : memref<1x128xf32, #tpu.memory_space<any>>) dst(%150 : memref<1x128xf32, #tpu.memory_space<vmem>>)
    %c10_i32_104 = arith.constant 10 : i32
    %c0_i32_105 = arith.constant 0 : i32
    %153 = tpu.memref_slice %arg2[%73, %c0_i32_105] : memref<32x128xf32, #tpu.memory_space<any>> -> memref<1x128xf32, #tpu.memory_space<any>>
    %c10_i32_106 = arith.constant 10 : i32
    %c0_i32_107 = arith.constant 0 : i32
    %154 = tpu.memref_slice %arg4[%c10_i32_106, %c0_i32_107] : memref<16x128xf32, #tpu.memory_space<vmem>> -> memref<1x128xf32, #tpu.memory_space<vmem>>
    %155 = tpu.memref_slice %arg5[%c10_i32_104] : memref<16x!tpu.dma_semaphore, #tpu.memory_space<semaphore_mem>> -> memref<1x!tpu.dma_semaphore, #tpu.memory_space<semaphore_mem>>
    %156 = tpu.memref_squeeze %155 : memref<1x!tpu.dma_semaphore, #tpu.memory_space<semaphore_mem>> -> memref<!tpu.dma_semaphore, #tpu.memory_space<semaphore_mem>>
    tpu.wait_dma2 semaphore(%156 : memref<!tpu.dma_semaphore, #tpu.memory_space<semaphore_mem>>) src(%153 : memref<1x128xf32, #tpu.memory_space<any>>) dst(%154 : memref<1x128xf32, #tpu.memory_space<vmem>>)
    %c11_i32_108 = arith.constant 11 : i32
    %c0_i32_109 = arith.constant 0 : i32
    %157 = tpu.memref_slice %arg2[%80, %c0_i32_109] : memref<32x128xf32, #tpu.memory_space<any>> -> memref<1x128xf32, #tpu.memory_space<any>>
    %c11_i32_110 = arith.constant 11 : i32
    %c0_i32_111 = arith.constant 0 : i32
    %158 = tpu.memref_slice %arg4[%c11_i32_110, %c0_i32_111] : memref<16x128xf32, #tpu.memory_space<vmem>> -> memref<1x128xf32, #tpu.memory_space<vmem>>
    %159 = tpu.memref_slice %arg5[%c11_i32_108] : memref<16x!tpu.dma_semaphore, #tpu.memory_space<semaphore_mem>> -> memref<1x!tpu.dma_semaphore, #tpu.memory_space<semaphore_mem>>
    %160 = tpu.memref_squeeze %159 : memref<1x!tpu.dma_semaphore, #tpu.memory_space<semaphore_mem>> -> memref<!tpu.dma_semaphore, #tpu.memory_space<semaphore_mem>>
    tpu.wait_dma2 semaphore(%160 : memref<!tpu.dma_semaphore, #tpu.memory_space<semaphore_mem>>) src(%157 : memref<1x128xf32, #tpu.memory_space<any>>) dst(%158 : memref<1x128xf32, #tpu.memory_space<vmem>>)
    %c12_i32_112 = arith.constant 12 : i32
    %c0_i32_113 = arith.constant 0 : i32
    %161 = tpu.memref_slice %arg2[%87, %c0_i32_113] : memref<32x128xf32, #tpu.memory_space<any>> -> memref<1x128xf32, #tpu.memory_space<any>>
    %c12_i32_114 = arith.constant 12 : i32
    %c0_i32_115 = arith.constant 0 : i32
    %162 = tpu.memref_slice %arg4[%c12_i32_114, %c0_i32_115] : memref<16x128xf32, #tpu.memory_space<vmem>> -> memref<1x128xf32, #tpu.memory_space<vmem>>
    %163 = tpu.memref_slice %arg5[%c12_i32_112] : memref<16x!tpu.dma_semaphore, #tpu.memory_space<semaphore_mem>> -> memref<1x!tpu.dma_semaphore, #tpu.memory_space<semaphore_mem>>
    %164 = tpu.memref_squeeze %163 : memref<1x!tpu.dma_semaphore, #tpu.memory_space<semaphore_mem>> -> memref<!tpu.dma_semaphore, #tpu.memory_space<semaphore_mem>>
    tpu.wait_dma2 semaphore(%164 : memref<!tpu.dma_semaphore, #tpu.memory_space<semaphore_mem>>) src(%161 : memref<1x128xf32, #tpu.memory_space<any>>) dst(%162 : memref<1x128xf32, #tpu.memory_space<vmem>>)
    %c13_i32_116 = arith.constant 13 : i32
    %c0_i32_117 = arith.constant 0 : i32
    %165 = tpu.memref_slice %arg2[%94, %c0_i32_117] : memref<32x128xf32, #tpu.memory_space<any>> -> memref<1x128xf32, #tpu.memory_space<any>>
    %c13_i32_118 = arith.constant 13 : i32
    %c0_i32_119 = arith.constant 0 : i32
    %166 = tpu.memref_slice %arg4[%c13_i32_118, %c0_i32_119] : memref<16x128xf32, #tpu.memory_space<vmem>> -> memref<1x128xf32, #tpu.memory_space<vmem>>
    %167 = tpu.memref_slice %arg5[%c13_i32_116] : memref<16x!tpu.dma_semaphore, #tpu.memory_space<semaphore_mem>> -> memref<1x!tpu.dma_semaphore, #tpu.memory_space<semaphore_mem>>
    %168 = tpu.memref_squeeze %167 : memref<1x!tpu.dma_semaphore, #tpu.memory_space<semaphore_mem>> -> memref<!tpu.dma_semaphore, #tpu.memory_space<semaphore_mem>>
    tpu.wait_dma2 semaphore(%168 : memref<!tpu.dma_semaphore, #tpu.memory_space<semaphore_mem>>) src(%165 : memref<1x128xf32, #tpu.memory_space<any>>) dst(%166 : memref<1x128xf32, #tpu.memory_space<vmem>>)
    %c14_i32_120 = arith.constant 14 : i32
    %c0_i32_121 = arith.constant 0 : i32
    %169 = tpu.memref_slice %arg2[%101, %c0_i32_121] : memref<32x128xf32, #tpu.memory_space<any>> -> memref<1x128xf32, #tpu.memory_space<any>>
    %c14_i32_122 = arith.constant 14 : i32
    %c0_i32_123 = arith.constant 0 : i32
    %170 = tpu.memref_slice %arg4[%c14_i32_122, %c0_i32_123] : memref<16x128xf32, #tpu.memory_space<vmem>> -> memref<1x128xf32, #tpu.memory_space<vmem>>
    %171 = tpu.memref_slice %arg5[%c14_i32_120] : memref<16x!tpu.dma_semaphore, #tpu.memory_space<semaphore_mem>> -> memref<1x!tpu.dma_semaphore, #tpu.memory_space<semaphore_mem>>
    %172 = tpu.memref_squeeze %171 : memref<1x!tpu.dma_semaphore, #tpu.memory_space<semaphore_mem>> -> memref<!tpu.dma_semaphore, #tpu.memory_space<semaphore_mem>>
    tpu.wait_dma2 semaphore(%172 : memref<!tpu.dma_semaphore, #tpu.memory_space<semaphore_mem>>) src(%169 : memref<1x128xf32, #tpu.memory_space<any>>) dst(%170 : memref<1x128xf32, #tpu.memory_space<vmem>>)
    %c15_i32_124 = arith.constant 15 : i32
    %c0_i32_125 = arith.constant 0 : i32
    %173 = tpu.memref_slice %arg2[%108, %c0_i32_125] : memref<32x128xf32, #tpu.memory_space<any>> -> memref<1x128xf32, #tpu.memory_space<any>>
    %c15_i32_126 = arith.constant 15 : i32
    %c0_i32_127 = arith.constant 0 : i32
    %174 = tpu.memref_slice %arg4[%c15_i32_126, %c0_i32_127] : memref<16x128xf32, #tpu.memory_space<vmem>> -> memref<1x128xf32, #tpu.memory_space<vmem>>
    %175 = tpu.memref_slice %arg5[%c15_i32_124] : memref<16x!tpu.dma_semaphore, #tpu.memory_space<semaphore_mem>> -> memref<1x!tpu.dma_semaphore, #tpu.memory_space<semaphore_mem>>
    %176 = tpu.memref_squeeze %175 : memref<1x!tpu.dma_semaphore, #tpu.memory_space<semaphore_mem>> -> memref<!tpu.dma_semaphore, #tpu.memory_space<semaphore_mem>>
    tpu.wait_dma2 semaphore(%176 : memref<!tpu.dma_semaphore, #tpu.memory_space<semaphore_mem>>) src(%173 : memref<1x128xf32, #tpu.memory_space<any>>) dst(%174 : memref<1x128xf32, #tpu.memory_space<vmem>>)
    %c0 = arith.constant 0 : index
    %c0_128 = arith.constant 0 : index
    %177 = vector.load %arg4[%c0, %c0_128] : memref<16x128xf32, #tpu.memory_space<vmem>>, vector<16x128xf32>
    %c0_129 = arith.constant 0 : index
    %c0_130 = arith.constant 0 : index
    %178 = vector.load %arg3[%c0_129, %c0_130] : memref<16x128xf32, #tpu.memory_space<vmem>>, vector<16x128xf32>
    tpu.vector_store %arg3[%c0_129, %c0_130], %177 {strides = array<i32>} : memref<16x128xf32, #tpu.memory_space<vmem>>, vector<16x128xf32>,
    return
  }
  func.func @transform_1(%arg0: i32, %arg1: memref<16xi32, #tpu.memory_space<smem>>) -> (i32, i32) {
    %c0_i32 = arith.constant 0 : i32
    %c0_i32_0 = arith.constant 0 : i32
    return %arg0, %c0_i32 : i32, i32
  }
}

</mosaic_0001>

<bundles_post_ra>
// kernel: tpu_custom_call.1
= control target key start
LH: loop header
LB: loop body
LE: loop exit
PB: predicated region body
PF: predicated region fallthrough
CT: control target
= control target key end

     0   :  { %s961_s9 = smov [#allocation5]   ;;  %s1241_s0 = inlined_call_operand.hbm [shape: s32[16], index: 0, kind: input, shape index: {}]   ;;  %s1242_s1 = inlined_call_operand.hbm [shape: f32[32,128], index: 1, kind: input, shape index: {}]   ;;  %s1243_s2 = inlined_call_operand.hbm [shape: f32[16,128], index: 2, kind: output, shape index: {}]  }
   0x1   :  { %8 = dma.hbm_to_smem %s1241_s0, 16, %s961_s9, [#allocation4] }
   0x2   :  { %925 = dma.done.wait [#allocation4], 16 }
   0x3   :  { %926 = vsyncadd [#allocation4], 4294967280 }
   0x4   :  { %10 = sfence }
   0x5   :  { %11 = vsyncpa [#allocation7], 0  ;;  %s13_s12 = sld [smem:[#allocation5]]  ;;  %s962_s13 = smov [#allocation2]  }
   0x6   :  { %s23_s14 = sshll.u32 %s962_s13, 4  ;;  %s999_s15 = sld [smem:[#allocation5 + $0x1]]  ;;  %s1001_s14 = int_to_ptr.vmem [resolvable:$true] %s23_s14 }
   0x7   :  { %s963_s16 = smov [#allocation2 + $0x1]   ;;  %s1003_s18 = sld [smem:[#allocation5 + $0x2]] }
   0x8   :  { %s40_s17 = sshll.u32 %s963_s16, 4  ;;  %s964_s19 = smov [#allocation2 + $0x2]   ;;  %s1005_s17 = int_to_ptr.vmem [resolvable:$true] %s40_s17 }
   0x9   :  { %s57_s0 = sshll.u32 %s964_s19, 4  ;;  %s1007_s20 = sld [smem:[#allocation5 + $0x3]]  ;;  %s1009_s0 = int_to_ptr.vmem [resolvable:$true] %s57_s0 }
   0xa   :  { %s1018_s29 = scalar_lea.hbm %s1242_s1, 512 }
   0xb   :  { %s478_s21 = sshll.u32 %s13_s12, 4 }
   0xc   :  { %s15_s24 = scalar_lea.hbm %s1242_s1, %s478_s21  ;;  %s480_s25 = sshll.u32 %s999_s15, 4 }
   0xd   :  { %s553_s26 = scalar_lea.hbm %s15_s24, 16  ;;  %p556_p1 = scmp.lt.s32.totalorder %s15_s24, %s1242_s1 }
   0xe   :  { %p554_p0 = scmp.ne.s32.totalorder %s15_s24, %s553_s26  ;;  %p557_p2 = scmp.lt.s32.totalorder %s1018_s29, %s553_s26 }
  0x10   :  { %p558_p3 = por %p557_p2, %p556_p1 }
  0x12   :  { %p559_p4 = pnand %p558_p3, %p554_p0 }
  0x14   :  { %562 = shalt.err (!%p559_p4)  }
  0x15   :  { %s563_s4 = scalar_lea.vmem %s1001_s14, 16  ;;  %s1027_s5 = scalar_lea.vmem %s1001_s14, 256 }
  0x16   :  { %p564_p5 = scmp.ne.s32.totalorder %s1001_s14, %s563_s4  ;;  %p568_p6 = scmp.lt.s32.totalorder %s1001_s14, %s1001_s14 }
  0x17   :  { %p569_p7 = scmp.lt.s32.totalorder %s1027_s5, %s563_s4 }
  0x19   :  { %p570_p8 = por %p569_p7, %p568_p6 }
  0x1b   :  { %p571_p9 = pnand %p570_p8, %p564_p5 }
  0x1d   :  { %574 = shalt.err (!%p571_p9)  }
  0x1e   :  { %26 = dma.hbm_to_vmem [thread:$0]  %s15_s24, 16, %s1001_s14, [#allocation3] }
  0x1f   :  { %s30_s8 = scalar_lea.hbm %s1242_s1, %s480_s25  ;;  %s482_s9 = sshll.u32 %s1003_s18, 4 }
  0x20   :  { %s575_s10 = scalar_lea.hbm %s30_s8, 16  ;;  %p578_p11 = scmp.lt.s32.totalorder %s30_s8, %s1242_s1 }
  0x21   :  { %p576_p10 = scmp.ne.s32.totalorder %s30_s8, %s575_s10  ;;  %p579_p12 = scmp.lt.s32.totalorder %s1018_s29, %s575_s10 }
  0x23   :  { %p580_p13 = por %p579_p12, %p578_p11 }
  0x25   :  { %p581_p0 = pnand %p580_p13, %p576_p10 }
  0x27   :  { %584 = shalt.err (!%p581_p0)  }
  0x28   :  { %s585_s13 = scalar_lea.vmem %s1005_s17, 16  ;;  %p590_p2 = scmp.lt.s32.totalorder %s1005_s17, %s1001_s14 }
  0x29   :  { %p586_p1 = scmp.ne.s32.totalorder %s1005_s17, %s585_s13  ;;  %p591_p3 = scmp.lt.s32.totalorder %s1027_s5, %s585_s13 }
  0x2b   :  { %p592_p4 = por %p591_p3, %p590_p2 }
  0x2d   :  { %p593_p5 = pnand %p592_p4, %p586_p1 }
  0x2f   :  { %596 = shalt.err (!%p593_p5)  }
  0x30   :  { %43 = dma.hbm_to_vmem [thread:$0]  %s30_s8, 16, %s1005_s17, [#allocation3 + $0x1] }
  0x31   :  { %s47_s18 = scalar_lea.hbm %s1242_s1, %s482_s9  ;;  %s484_s19 = sshll.u32 %s1007_s20, 4 }
  0x32   :  { %s597_s21 = scalar_lea.hbm %s47_s18, 16  ;;  %p600_p7 = scmp.lt.s32.totalorder %s47_s18, %s1242_s1 }
  0x33   :  { %p598_p6 = scmp.ne.s32.totalorder %s47_s18, %s597_s21  ;;  %p601_p8 = scmp.lt.s32.totalorder %s1018_s29, %s597_s21 }
  0x35   :  { %p602_p9 = por %p601_p8, %p600_p7 }
  0x37   :  { %p603_p10 = pnand %p602_p9, %p598_p6 }
  0x39   :  { %606 = shalt.err (!%p603_p10)  }
  0x3a   :  { %s607_s17 = scalar_lea.vmem %s1009_s0, 16  ;;  %p612_p12 = scmp.lt.s32.totalorder %s1009_s0, %s1001_s14 }
  0x3b   :  { %p608_p11 = scmp.ne.s32.totalorder %s1009_s0, %s607_s17  ;;  %p613_p13 = scmp.lt.s32.totalorder %s1027_s5, %s607_s17 }
  0x3d   :  { %p614_p0 = por %p613_p13, %p612_p12 }
  0x3f   :  { %p615_p1 = pnand %p614_p0, %p608_p11 }
  0x41   :  { %618 = shalt.err (!%p615_p1)  }
  0x42   :  { %60 = dma.hbm_to_vmem [thread:$0]  %s47_s18, 16, %s1009_s0, [#allocation3 + $0x2] }
  0x43   :  { %s64_s25 = scalar_lea.hbm %s1242_s1, %s484_s19  ;;  %s965_s26 = smov [#allocation2 + $0x3]  }
  0x44   :  { %s74_s27 = sshll.u32 %s965_s26, 4  ;;  %s485_s28 = sld [smem:[#allocation5 + $0x4]]  ;;  %s75_s27 = int_to_ptr.vmem [resolvable:$true] %s74_s27 }
  0x45   :  { %s619_s30 = scalar_lea.hbm %s64_s25, 16  ;;  %p622_p3 = scmp.lt.s32.totalorder %s64_s25, %s1242_s1 }
  0x46   :  { %p620_p2 = scmp.ne.s32.totalorder %s64_s25, %s619_s30  ;;  %p623_p4 = scmp.lt.s32.totalorder %s1018_s29, %s619_s30 }
  0x48   :  { %p624_p5 = por %p623_p4, %p622_p3 }
  0x4a   :  { %p625_p6 = pnand %p624_p5, %p620_p2 }
  0x4c   :  { %628 = shalt.err (!%p625_p6)  }
  0x4d   :  { %s629_s6 = scalar_lea.vmem %s75_s27, 16  ;;  %p634_p8 = scmp.lt.s32.totalorder %s75_s27, %s1001_s14 }
  0x4e   :  { %p630_p7 = scmp.ne.s32.totalorder %s75_s27, %s629_s6  ;;  %p635_p9 = scmp.lt.s32.totalorder %s1027_s5, %s629_s6 }
  0x50   :  { %p636_p10 = por %p635_p9, %p634_p8 }
  0x52   :  { %p637_p11 = pnand %p636_p10, %p630_p7 }
  0x54   :  { %640 = shalt.err (!%p637_p11)  }
  0x55   :  { %77 = dma.hbm_to_vmem [thread:$0]  %s64_s25, 16, %s75_s27, [#allocation3 + $0x3] }
  0x56   :  { %s966_s0 = smov [#allocation2 + $0x4]   ;;  %s487_s8 = sld [smem:[#allocation5 + $0x5]] }
  0x57   :  { %s91_s7 = sshll.u32 %s966_s0, 4  ;;  %s967_s9 = smov [#allocation2 + $0x5]   ;;  %s92_s7 = int_to_ptr.vmem [resolvable:$true] %s91_s7 }
  0x58   :  { %s108_s10 = sshll.u32 %s967_s9, 4  ;;  %s1070_s11 = sld [smem:[#allocation5 + $0x6]]  ;;  %s1072_s10 = int_to_ptr.vmem [resolvable:$true] %s108_s10 }
  0x59   :  { %s486_s12 = sshll.u32 %s485_s28, 4 }
  0x5a   :  { %s81_s16 = scalar_lea.hbm %s1242_s1, %s486_s12 }
  0x5b   :  { %s641_s18 = scalar_lea.hbm %s81_s16, 16  ;;  %p644_p13 = scmp.lt.s32.totalorder %s81_s16, %s1242_s1 }
  0x5c   :  { %p642_p12 = scmp.ne.s32.totalorder %s81_s16, %s641_s18  ;;  %p645_p0 = scmp.lt.s32.totalorder %s1018_s29, %s641_s18 }
  0x5e   :  { %p646_p1 = por %p645_p0, %p644_p13 }
  0x60   :  { %p647_p2 = pnand %p646_p1, %p642_p12 }
  0x62   :  { %650 = shalt.err (!%p647_p2)  }
  0x63   :  { %s651_s22 = scalar_lea.vmem %s92_s7, 16  ;;  %p656_p4 = scmp.lt.s32.totalorder %s92_s7, %s1001_s14 }
  0x64   :  { %p652_p3 = scmp.ne.s32.totalorder %s92_s7, %s651_s22  ;;  %p657_p5 = scmp.lt.s32.totalorder %s1027_s5, %s651_s22 }
  0x66   :  { %p658_p6 = por %p657_p5, %p656_p4 }
  0x68   :  { %p659_p7 = pnand %p658_p6, %p652_p3 }
  0x6a   :  { %662 = shalt.err (!%p659_p7)  }
  0x6b   :  { %94 = dma.hbm_to_vmem [thread:$0]  %s81_s16, 16, %s92_s7, [#allocation3 + $0x4] }
  0x6c   :  { %s488_s23 = sshll.u32 %s487_s8, 4  ;;  %s968_s17 = smov [#allocation2 + $0x6]  }
  0x6d   :  { %s125_s20 = sshll.u32 %s968_s17, 4  ;;  %s98_s26 = scalar_lea.hbm %s1242_s1, %s488_s23  ;;  %s1086_s20 = int_to_ptr.vmem [resolvable:$true] %s125_s20 }
  0x6e   :  { %s663_s27 = scalar_lea.hbm %s98_s26, 16  ;;  %p666_p9 = scmp.lt.s32.totalorder %s98_s26, %s1242_s1 }
  0x6f   :  { %p664_p8 = scmp.ne.s32.totalorder %s98_s26, %s663_s27  ;;  %p667_p10 = scmp.lt.s32.totalorder %s1018_s29, %s663_s27 }
  0x71   :  { %p668_p11 = por %p667_p10, %p666_p9 }
  0x73   :  { %p669_p12 = pnand %p668_p11, %p664_p8 }
  0x75   :  { %672 = shalt.err (!%p669_p12)  }
  0x76   :  { %s673_s3 = scalar_lea.vmem %s1072_s10, 16  ;;  %p678_p0 = scmp.lt.s32.totalorder %s1072_s10, %s1001_s14 }
  0x77   :  { %p674_p13 = scmp.ne.s32.totalorder %s1072_s10, %s673_s3  ;;  %p679_p1 = scmp.lt.s32.totalorder %s1027_s5, %s673_s3 }
  0x79   :  { %p680_p2 = por %p679_p1, %p678_p0 }
  0x7b   :  { %p681_p3 = pnand %p680_p2, %p674_p13 }
  0x7d   :  { %684 = shalt.err (!%p681_p3)  }
  0x7e   :  { %111 = dma.hbm_to_vmem [thread:$0]  %s98_s26, 16, %s1072_s10, [#allocation3 + $0x5] }
  0x7f   :  { %s490_s4 = sshll.u32 %s1070_s11, 4  ;;  %s491_s6 = sld [smem:[#allocation5 + $0x7]] }
  0x80   :  { %s115_s8 = scalar_lea.hbm %s1242_s1, %s490_s4 }
  0x81   :  { %s685_s9 = scalar_lea.hbm %s115_s8, 16  ;;  %p688_p5 = scmp.lt.s32.totalorder %s115_s8, %s1242_s1 }
  0x82   :  { %p686_p4 = scmp.ne.s32.totalorder %s115_s8, %s685_s9  ;;  %p689_p6 = scmp.lt.s32.totalorder %s1018_s29, %s685_s9 }
  0x84   :  { %p690_p7 = por %p689_p6, %p688_p5 }
  0x86   :  { %p691_p8 = pnand %p690_p7, %p686_p4 }
  0x88   :  { %694 = shalt.err (!%p691_p8)  }
  0x89   :  { %s695_s10 = scalar_lea.vmem %s1086_s20, 16  ;;  %p700_p10 = scmp.lt.s32.totalorder %s1086_s20, %s1001_s14 }
  0x8a   :  { %p696_p9 = scmp.ne.s32.totalorder %s1086_s20, %s695_s10  ;;  %p701_p11 = scmp.lt.s32.totalorder %s1027_s5, %s695_s10 }
  0x8c   :  { %p702_p12 = por %p701_p11, %p700_p10 }
  0x8e   :  { %p703_p13 = pnand %p702_p12, %p696_p9 }
  0x90   :  { %706 = shalt.err (!%p703_p13)  }
  0x91   :  { %128 = dma.hbm_to_vmem [thread:$0]  %s115_s8, 16, %s1086_s20, [#allocation3 + $0x6] }
  0x92   :  { %s969_s11 = smov [#allocation2 + $0x7]   ;;  %s493_s16 = sld [smem:[#allocation5 + $0x8]] }
  0x93   :  { %s142_s15 = sshll.u32 %s969_s11, 4  ;;  %s970_s18 = smov [#allocation2 + $0x8]   ;;  %s143_s15 = int_to_ptr.vmem [resolvable:$true] %s142_s15 }
  0x94   :  { %s159_s19 = sshll.u32 %s970_s18, 4  ;;  %s1112_s21 = sld [smem:[#allocation5 + $0x9]]  ;;  %s1114_s19 = int_to_ptr.vmem [resolvable:$true] %s159_s19 }
  0x95   :  { %s492_s22 = sshll.u32 %s491_s6, 4 }
  0x96   :  { %s132_s24 = scalar_lea.hbm %s1242_s1, %s492_s22 }
  0x97   :  { %s707_s25 = scalar_lea.hbm %s132_s24, 16  ;;  %p710_p1 = scmp.lt.s32.totalorder %s132_s24, %s1242_s1 }
  0x98   :  { %p708_p0 = scmp.ne.s32.totalorder %s132_s24, %s707_s25  ;;  %p711_p2 = scmp.lt.s32.totalorder %s1018_s29, %s707_s25 }
  0x9a   :  { %p712_p3 = por %p711_p2, %p710_p1 }
  0x9c   :  { %p713_p4 = pnand %p712_p3, %p708_p0 }
  0x9e   :  { %716 = shalt.err (!%p713_p4)  }
  0x9f   :  { %s717_s20 = scalar_lea.vmem %s143_s15, 16  ;;  %p722_p6 = scmp.lt.s32.totalorder %s143_s15, %s1001_s14 }
  0xa0   :  { %p718_p5 = scmp.ne.s32.totalorder %s143_s15, %s717_s20  ;;  %p723_p7 = scmp.lt.s32.totalorder %s1027_s5, %s717_s20 }
  0xa2   :  { %p724_p8 = por %p723_p7, %p722_p6 }
  0xa4   :  { %p725_p9 = pnand %p724_p8, %p718_p5 }
  0xa6   :  { %728 = shalt.err (!%p725_p9)  }
  0xa7   :  { %145 = dma.hbm_to_vmem [thread:$0]  %s132_s24, 16, %s143_s15, [#allocation3 + $0x7] }
  0xa8   :  { %s494_s28 = sshll.u32 %s493_s16, 4  ;;  %s971_s30 = smov [#allocation2 + $0x9]  }
  0xa9   :  { %s176_s3 = sshll.u32 %s971_s30, 4  ;;  %s149_s0 = scalar_lea.hbm %s1242_s1, %s494_s28  ;;  %s1128_s3 = int_to_ptr.vmem [resolvable:$true] %s176_s3 }
  0xaa   :  { %s729_s7 = scalar_lea.hbm %s149_s0, 16  ;;  %p732_p11 = scmp.lt.s32.totalorder %s149_s0, %s1242_s1 }
  0xab   :  { %p730_p10 = scmp.ne.s32.totalorder %s149_s0, %s729_s7  ;;  %p733_p12 = scmp.lt.s32.totalorder %s1018_s29, %s729_s7 }
  0xad   :  { %p734_p13 = por %p733_p12, %p732_p11 }
  0xaf   :  { %p735_p0 = pnand %p734_p13, %p730_p10 }
  0xb1   :  { %738 = shalt.err (!%p735_p0)  }
  0xb2   :  { %s739_s12 = scalar_lea.vmem %s1114_s19, 16  ;;  %p744_p2 = scmp.lt.s32.totalorder %s1114_s19, %s1001_s14 }
  0xb3   :  { %p740_p1 = scmp.ne.s32.totalorder %s1114_s19, %s739_s12  ;;  %p745_p3 = scmp.lt.s32.totalorder %s1027_s5, %s739_s12 }
  0xb5   :  { %p746_p4 = por %p745_p3, %p744_p2 }
  0xb7   :  { %p747_p5 = pnand %p746_p4, %p740_p1 }
  0xb9   :  { %750 = shalt.err (!%p747_p5)  }
  0xba   :  { %162 = dma.hbm_to_vmem [thread:$0]  %s149_s0, 16, %s1114_s19, [#allocation3 + $0x8] }
  0xbb   :  { %s496_s13 = sshll.u32 %s1112_s21, 4  ;;  %s497_s10 = sld [smem:[#allocation5 + $0xa]] }
  0xbc   :  { %s166_s16 = scalar_lea.hbm %s1242_s1, %s496_s13 }
  0xbd   :  { %s751_s18 = scalar_lea.hbm %s166_s16, 16  ;;  %p754_p7 = scmp.lt.s32.totalorder %s166_s16, %s1242_s1 }
  0xbe   :  { %p752_p6 = scmp.ne.s32.totalorder %s166_s16, %s751_s18  ;;  %p755_p8 = scmp.lt.s32.totalorder %s1018_s29, %s751_s18 }
  0xc0   :  { %p756_p9 = por %p755_p8, %p754_p7 }
  0xc2   :  { %p757_p10 = pnand %p756_p9, %p752_p6 }
  0xc4   :  { %760 = shalt.err (!%p757_p10)  }
  0xc5   :  { %s761_s19 = scalar_lea.vmem %s1128_s3, 16  ;;  %p766_p12 = scmp.lt.s32.totalorder %s1128_s3, %s1001_s14 }
  0xc6   :  { %p762_p11 = scmp.ne.s32.totalorder %s1128_s3, %s761_s19  ;;  %p767_p13 = scmp.lt.s32.totalorder %s1027_s5, %s761_s19 }
  0xc8   :  { %p768_p0 = por %p767_p13, %p766_p12 }
  0xca   :  { %p769_p1 = pnand %p768_p0, %p762_p11 }
  0xcc   :  { %772 = shalt.err (!%p769_p1)  }
  0xcd   :  { %179 = dma.hbm_to_vmem [thread:$0]  %s166_s16, 16, %s1128_s3, [#allocation3 + $0x9] }
  0xce   :  { %s972_s21 = smov [#allocation2 + $0xa]   ;;  %s499_s24 = sld [smem:[#allocation5 + $0xb]] }
  0xcf   :  { %s193_s17 = sshll.u32 %s972_s21, 4  ;;  %s973_s25 = smov [#allocation2 + $0xb]   ;;  %s194_s17 = int_to_ptr.vmem [resolvable:$true] %s193_s17 }
  0xd0   :  { %s210_s26 = sshll.u32 %s973_s25, 4  ;;  %s1154_s27 = sld [smem:[#allocation5 + $0xc]]  ;;  %s1156_s26 = int_to_ptr.vmem [resolvable:$true] %s210_s26 }
  0xd1   :  { %s498_s20 = sshll.u32 %s497_s10, 4 }
  0xd2   :  { %s183_s4 = scalar_lea.hbm %s1242_s1, %s498_s20 }
  0xd3   :  { %s773_s6 = scalar_lea.hbm %s183_s4, 16  ;;  %p776_p3 = scmp.lt.s32.totalorder %s183_s4, %s1242_s1 }
  0xd4   :  { %p774_p2 = scmp.ne.s32.totalorder %s183_s4, %s773_s6  ;;  %p777_p4 = scmp.lt.s32.totalorder %s1018_s29, %s773_s6 }
  0xd6   :  { %p778_p5 = por %p777_p4, %p776_p3 }
  0xd8   :  { %p779_p6 = pnand %p778_p5, %p774_p2 }
  0xda   :  { %782 = shalt.err (!%p779_p6)  }
  0xdb   :  { %s783_s3 = scalar_lea.vmem %s194_s17, 16  ;;  %p788_p8 = scmp.lt.s32.totalorder %s194_s17, %s1001_s14 }
  0xdc   :  { %p784_p7 = scmp.ne.s32.totalorder %s194_s17, %s783_s3  ;;  %p789_p9 = scmp.lt.s32.totalorder %s1027_s5, %s783_s3 }
  0xde   :  { %p790_p10 = por %p789_p9, %p788_p8 }
  0xe0   :  { %p791_p11 = pnand %p790_p10, %p784_p7 }
  0xe2   :  { %794 = shalt.err (!%p791_p11)  }
  0xe3   :  { %196 = dma.hbm_to_vmem [thread:$0]  %s183_s4, 16, %s194_s17, [#allocation3 + $0xa] }
  0xe4   :  { %s500_s8 = sshll.u32 %s499_s24, 4  ;;  %s974_s9 = smov [#allocation2 + $0xc]  }
  0xe5   :  { %s227_s12 = sshll.u32 %s974_s9, 4  ;;  %s200_s11 = scalar_lea.hbm %s1242_s1, %s500_s8  ;;  %s1170_s12 = int_to_ptr.vmem [resolvable:$true] %s227_s12 }
  0xe6   :  { %s795_s15 = scalar_lea.hbm %s200_s11, 16  ;;  %p798_p13 = scmp.lt.s32.totalorder %s200_s11, %s1242_s1 }
  0xe7   :  { %p796_p12 = scmp.ne.s32.totalorder %s200_s11, %s795_s15  ;;  %p799_p0 = scmp.lt.s32.totalorder %s1018_s29, %s795_s15 }
  0xe9   :  { %p800_p1 = por %p799_p0, %p798_p13 }
  0xeb   :  { %p801_p2 = pnand %p800_p1, %p796_p12 }
  0xed   :  { %804 = shalt.err (!%p801_p2)  }
  0xee   :  { %s805_s22 = scalar_lea.vmem %s1156_s26, 16  ;;  %p810_p4 = scmp.lt.s32.totalorder %s1156_s26, %s1001_s14 }
  0xef   :  { %p806_p3 = scmp.ne.s32.totalorder %s1156_s26, %s805_s22  ;;  %p811_p5 = scmp.lt.s32.totalorder %s1027_s5, %s805_s22 }
  0xf1   :  { %p812_p6 = por %p811_p5, %p810_p4 }
  0xf3   :  { %p813_p7 = pnand %p812_p6, %p806_p3 }
  0xf5   :  { %816 = shalt.err (!%p813_p7)  }
  0xf6   :  { %213 = dma.hbm_to_vmem [thread:$0]  %s200_s11, 16, %s1156_s26, [#allocation3 + $0xb] }
  0xf7   :  { %s502_s23 = sshll.u32 %s1154_s27, 4  ;;  %s503_s19 = sld [smem:[#allocation5 + $0xd]] }
  0xf8   :  { %s217_s24 = scalar_lea.hbm %s1242_s1, %s502_s23 }
  0xf9   :  { %s817_s25 = scalar_lea.hbm %s217_s24, 16  ;;  %p820_p9 = scmp.lt.s32.totalorder %s217_s24, %s1242_s1 }
  0xfa   :  { %p818_p8 = scmp.ne.s32.totalorder %s217_s24, %s817_s25  ;;  %p821_p10 = scmp.lt.s32.totalorder %s1018_s29, %s817_s25 }
  0xfc   :  { %p822_p11 = por %p821_p10, %p820_p9 }
  0xfe   :  { %p823_p12 = pnand %p822_p11, %p818_p8 }
 0x100   :  { %826 = shalt.err (!%p823_p12)  }
 0x101   :  { %s827_s26 = scalar_lea.vmem %s1170_s12, 16  ;;  %p832_p0 = scmp.lt.s32.totalorder %s1170_s12, %s1001_s14 }
 0x102   :  { %p828_p13 = scmp.ne.s32.totalorder %s1170_s12, %s827_s26  ;;  %p833_p1 = scmp.lt.s32.totalorder %s1027_s5, %s827_s26 }
 0x104   :  { %p834_p2 = por %p833_p1, %p832_p0 }
 0x106   :  { %p835_p3 = pnand %p834_p2, %p828_p13 }
 0x108   :  { %838 = shalt.err (!%p835_p3)  }
 0x109   :  { %230 = dma.hbm_to_vmem [thread:$0]  %s217_s24, 16, %s1170_s12, [#allocation3 + $0xc] }
 0x10a   :  { %s975_s27 = smov [#allocation2 + $0xd]   ;;  %s505_s4 = sld [smem:[#allocation5 + $0xe]] }
 0x10b   :  { %s244_s30 = sshll.u32 %s975_s27, 4  ;;  %s976_s6 = smov [#allocation2 + $0xe]   ;;  %s245_s30 = int_to_ptr.vmem [resolvable:$true] %s244_s30 }
 0x10c   :  { %s261_s0 = sshll.u32 %s976_s6, 4  ;;  %s1196_s7 = sld [smem:[#allocation5 + $0xf]]  ;;  %s1198_s0 = int_to_ptr.vmem [resolvable:$true] %s261_s0 }
 0x10d   :  { %s504_s3 = sshll.u32 %s503_s19, 4 }
 0x10e   :  { %s234_s13 = scalar_lea.hbm %s1242_s1, %s504_s3 }
 0x10f   :  { %s839_s10 = scalar_lea.hbm %s234_s13, 16  ;;  %p842_p5 = scmp.lt.s32.totalorder %s234_s13, %s1242_s1 }
 0x110   :  { %p840_p4 = scmp.ne.s32.totalorder %s234_s13, %s839_s10  ;;  %p843_p6 = scmp.lt.s32.totalorder %s1018_s29, %s839_s10 }
 0x112   :  { %p844_p7 = por %p843_p6, %p842_p5 }
 0x114   :  { %p845_p8 = pnand %p844_p7, %p840_p4 }
 0x116   :  { %848 = shalt.err (!%p845_p8)  }
 0x117   :  { %s849_s12 = scalar_lea.vmem %s245_s30, 16  ;;  %p854_p10 = scmp.lt.s32.totalorder %s245_s30, %s1001_s14 }
 0x118   :  { %p850_p9 = scmp.ne.s32.totalorder %s245_s30, %s849_s12  ;;  %p855_p11 = scmp.lt.s32.totalorder %s1027_s5, %s849_s12 }
 0x11a   :  { %p856_p12 = por %p855_p11, %p854_p10 }
 0x11c   :  { %p857_p13 = pnand %p856_p12, %p850_p9 }
 0x11e   :  { %860 = shalt.err (!%p857_p13)  }
 0x11f   :  { %247 = dma.hbm_to_vmem [thread:$0]  %s234_s13, 16, %s245_s30, [#allocation3 + $0xd] }
 0x120   :  { %s506_s16 = sshll.u32 %s505_s4, 4  ;;  %s977_s18 = smov [#allocation2 + $0xf]  }
 0x121   :  { %s278_s22 = sshll.u32 %s977_s18, 4  ;;  %s251_s21 = scalar_lea.hbm %s1242_s1, %s506_s16  ;;  %s1212_s22 = int_to_ptr.vmem [resolvable:$true] %s278_s22 }
 0x122   :  { %s861_s17 = scalar_lea.hbm %s251_s21, 16  ;;  %p864_p1 = scmp.lt.s32.totalorder %s251_s21, %s1242_s1 }
 0x123   :  { %p862_p0 = scmp.ne.s32.totalorder %s251_s21, %s861_s17  ;;  %p865_p2 = scmp.lt.s32.totalorder %s1018_s29, %s861_s17 }
 0x125   :  { %p866_p3 = por %p865_p2, %p864_p1 }
 0x127   :  { %p867_p4 = pnand %p866_p3, %p862_p0 }
 0x129   :  { %870 = shalt.err (!%p867_p4)  }
 0x12a   :  { %s871_s20 = scalar_lea.vmem %s1198_s0, 16  ;;  %p876_p6 = scmp.lt.s32.totalorder %s1198_s0, %s1001_s14 }
 0x12b   :  { %p872_p5 = scmp.ne.s32.totalorder %s1198_s0, %s871_s20  ;;  %p877_p7 = scmp.lt.s32.totalorder %s1027_s5, %s871_s20 }
 0x12d   :  { %p878_p8 = por %p877_p7, %p876_p6 }
 0x12f   :  { %p879_p9 = pnand %p878_p8, %p872_p5 }
 0x131   :  { %882 = shalt.err (!%p879_p9)  }
 0x132   :  { %264 = dma.hbm_to_vmem [thread:$0]  %s251_s21, 16, %s1198_s0, [#allocation3 + $0xe] }
 0x133   :  { %s508_s28 = sshll.u32 %s1196_s7, 4 }
 0x134   :  { %s268_s30 = scalar_lea.hbm %s1242_s1, %s508_s28 }
 0x135   :  { %s883_s4 = scalar_lea.hbm %s268_s30, 16  ;;  %p886_p11 = scmp.lt.s32.totalorder %s268_s30, %s1242_s1 }
 0x136   :  { %p884_p10 = scmp.ne.s32.totalorder %s268_s30, %s883_s4  ;;  %p887_p12 = scmp.lt.s32.totalorder %s1018_s29, %s883_s4 }
 0x138   :  { %p888_p13 = por %p887_p12, %p886_p11 }
 0x13a   :  { %p889_p0 = pnand %p888_p13, %p884_p10 }
 0x13c   :  { %892 = shalt.err (!%p889_p0)  }
 0x13d   :  { %s893_s0 = scalar_lea.vmem %s1212_s22, 16  ;;  %p898_p2 = scmp.lt.s32.totalorder %s1212_s22, %s1001_s14 }
 0x13e   :  { %p894_p1 = scmp.ne.s32.totalorder %s1212_s22, %s893_s0  ;;  %p899_p3 = scmp.lt.s32.totalorder %s1027_s5, %s893_s0 }
 0x140   :  { %p900_p4 = por %p899_p3, %p898_p2 }
 0x142   :  { %p901_p5 = pnand %p900_p4, %p894_p1 }
 0x144   :  { %904 = shalt.err (!%p901_p5)  }
 0x145   :  { %281 = dma.hbm_to_vmem [thread:$0]  %s268_s30, 16, %s1212_s22, [#allocation3 + $0xf] }
 0x146   :  { %927 = dma.done.wait [#allocation3], 16 }
 0x147   :  { %928 = vsyncadd [#allocation3], 4294967280 }
 0x148   :  { %929 = dma.done.wait [#allocation3 + $0x1], 16 }
 0x149   :  { %930 = vsyncadd [#allocation3 + $0x1], 4294967280 }
 0x14a   :  { %931 = dma.done.wait [#allocation3 + $0x2], 16 }
 0x14b   :  { %932 = vsyncadd [#allocation3 + $0x2], 4294967280 }
 0x14c   :  { %933 = dma.done.wait [#allocation3 + $0x3], 16 }
 0x14d   :  { %934 = vsyncadd [#allocation3 + $0x3], 4294967280 }
 0x14e   :  { %935 = dma.done.wait [#allocation3 + $0x4], 16 }
 0x14f   :  { %936 = vsyncadd [#allocation3 + $0x4], 4294967280 }
 0x150   :  { %937 = dma.done.wait [#allocation3 + $0x5], 16 }
 0x151   :  { %938 = vsyncadd [#allocation3 + $0x5], 4294967280 }
 0x152   :  { %939 = dma.done.wait [#allocation3 + $0x6], 16 }
 0x153   :  { %940 = vsyncadd [#allocation3 + $0x6], 4294967280 }
 0x154   :  { %941 = dma.done.wait [#allocation3 + $0x7], 16 }
 0x155   :  { %942 = vsyncadd [#allocation3 + $0x7], 4294967280 }
 0x156   :  { %943 = dma.done.wait [#allocation3 + $0x8], 16 }
 0x157   :  { %944 = vsyncadd [#allocation3 + $0x8], 4294967280 }
 0x158   :  { %945 = dma.done.wait [#allocation3 + $0x9], 16 }
 0x159   :  { %946 = vsyncadd [#allocation3 + $0x9], 4294967280 }
 0x15a   :  { %947 = dma.done.wait [#allocation3 + $0xa], 16 }
 0x15b   :  { %948 = vsyncadd [#allocation3 + $0xa], 4294967280 }
 0x15c   :  { %949 = dma.done.wait [#allocation3 + $0xb], 16 }
 0x15d   :  { %950 = vsyncadd [#allocation3 + $0xb], 4294967280 }
 0x15e   :  { %951 = dma.done.wait [#allocation3 + $0xc], 16 }
 0x15f   :  { %952 = vsyncadd [#allocation3 + $0xc], 4294967280 }
 0x160   :  { %953 = dma.done.wait [#allocation3 + $0xd], 16 }
 0x161   :  { %954 = vsyncadd [#allocation3 + $0xd], 4294967280 }
 0x162   :  { %955 = dma.done.wait [#allocation3 + $0xe], 16 }
 0x163   :  { %956 = vsyncadd [#allocation3 + $0xe], 4294967280 }
 0x164   :  { %957 = dma.done.wait [#allocation3 + $0xf], 16 }
 0x165   :  { %958 = vsyncadd [#allocation3 + $0xf], 4294967280  ;;  %s978_s1 = smov [#allocation6]   ;;  %v315_v0 = vld [vmem:[#allocation2] sm:$0xff]  ;;  %v316_v1 = vld [vmem:[#allocation2 + $0x8] sm:$0xff] }
 0x166   :  { %s324_s14 = sshll.u32 %s978_s1, 4  ;;  %317 = vst [vmem:[#allocation6] sm:$0xff] %v315_v0  ;;  %318 = vst [vmem:[#allocation6 + $0x8] sm:$0xff] %v316_v1  ;;  %s325_s14 = int_to_ptr.vmem [resolvable:$true] %s324_s14 }
 0x167   :  { %s905_s29 = scalar_lea.vmem %s325_s14, 256  ;;  %p910_p7 = scmp.lt.s32.totalorder %s325_s14, %s325_s14 }
 0x168   :  { %p906_p6 = scmp.ne.s32.totalorder %s325_s14, %s905_s29  ;;  %p911_p8 = scmp.lt.s32.totalorder %s905_s29, %s905_s29 }
 0x16a   :  { %p912_p9 = por %p911_p8, %p910_p7 }
 0x16c   :  { %p913_p10 = pnand %p912_p9, %p906_p6 }
 0x16e   :  { %916 = shalt.err (!%p913_p10)
}
 0x16f   :  { %s979_s5 = smov 128   ;;  %s980_s7 = smov 8  }
 0x170   :  { %330 = dma.vmem_to_hbm [thread:$0]  %s325_s14, 256, %s1243_s2, [#allocation7], %s979_s5, %s979_s5, %s980_s7  }
 0x171   :  { %959 = dma.done.wait [#allocation7], 256  }
 0x172   :  { %960 = vsyncadd [#allocation7], 4294967040 }
 0x173   :  { %334 = vsyncpa [#allocation7], 1 }
 0x174   :  { %335 = vsyncmov [#allocation3] }
 0x177   :  { %s336_s13 = vpop.sfrf %335 }
 0x178   :  { %p509_p11 = scmp.ne.s32.totalorder %s336_s13, 0 }
 0x17a   :  { %340 = shalt.err (%p509_p11)  }
 0x17b   :  { %342 = vsyncmov [#allocation3 + $0x1] }
 0x17e   :  { %s343_s10 = vpop.sfrf %342 }
 0x17f   :  { %p510_p12 = scmp.ne.s32.totalorder %s343_s10, 0 }
 0x181   :  { %347 = shalt.err (%p510_p12)  }
 0x182   :  { %349 = vsyncmov [#allocation3 + $0x2] }
 0x185   :  { %s350_s11 = vpop.sfrf %349 }
 0x186   :  { %p511_p13 = scmp.ne.s32.totalorder %s350_s11, 0 }
 0x188   :  { %354 = shalt.err (%p511_p13)  }
 0x189   :  { %356 = vsyncmov [#allocation3 + $0x3] }
 0x18c   :  { %s357_s15 = vpop.sfrf %356 }
 0x18d   :  { %p512_p0 = scmp.ne.s32.totalorder %s357_s15, 0 }
 0x18f   :  { %361 = shalt.err (%p512_p0)  }
 0x190   :  { %363 = vsyncmov [#allocation3 + $0x4] }
 0x193   :  { %s364_s2 = vpop.sfrf %363 }
 0x194   :  { %p513_p1 = scmp.ne.s32.totalorder %s364_s2, 0 }
 0x196   :  { %368 = shalt.err (%p513_p1)  }
 0x197   :  { %370 = vsyncmov [#allocation3 + $0x5] }
 0x19a   :  { %s371_s12 = vpop.sfrf %370 }
 0x19b   :  { %p514_p2 = scmp.ne.s32.totalorder %s371_s12, 0 }
 0x19d   :  { %375 = shalt.err (%p514_p2)  }
 0x19e   :  { %377 = vsyncmov [#allocation3 + $0x6] }
 0x1a1   :  { %s378_s16 = vpop.sfrf %377 }
 0x1a2   :  { %p515_p3 = scmp.ne.s32.totalorder %s378_s16, 0 }
 0x1a4   :  { %382 = shalt.err (%p515_p3)  }
 0x1a5   :  { %384 = vsyncmov [#allocation3 + $0x7] }
 0x1a8   :  { %s385_s18 = vpop.sfrf %384 }
 0x1a9   :  { %p516_p4 = scmp.ne.s32.totalorder %s385_s18, 0 }
 0x1ab   :  { %389 = shalt.err (%p516_p4)  }
 0x1ac   :  { %391 = vsyncmov [#allocation3 + $0x8] }
 0x1af   :  { %s392_s22 = vpop.sfrf %391 }
 0x1b0   :  { %p517_p5 = scmp.ne.s32.totalorder %s392_s22, 0 }
 0x1b2   :  { %396 = shalt.err (%p517_p5)  }
 0x1b3   :  { %398 = vsyncmov [#allocation3 + $0x9] }
 0x1b6   :  { %s399_s23 = vpop.sfrf %398 }
 0x1b7   :  { %p518_p6 = scmp.ne.s32.totalorder %s399_s23, 0 }
 0x1b9   :  { %403 = shalt.err (%p518_p6)  }
 0x1ba   :  { %405 = vsyncmov [#allocation3 + $0xa] }
 0x1bd   :  { %s406_s19 = vpop.sfrf %405 }
 0x1be   :  { %p519_p7 = scmp.ne.s32.totalorder %s406_s19, 0 }
 0x1c0   :  { %410 = shalt.err (%p519_p7)  }
 0x1c1   :  { %412 = vsyncmov [#allocation3 + $0xb] }
 0x1c4   :  { %s413_s21 = vpop.sfrf %412 }
 0x1c5   :  { %p520_p8 = scmp.ne.s32.totalorder %s413_s21, 0 }
 0x1c7   :  { %417 = shalt.err (%p520_p8)  }
 0x1c8   :  { %419 = vsyncmov [#allocation3 + $0xc] }
 0x1cb   :  { %s420_s17 = vpop.sfrf %419 }
 0x1cc   :  { %p521_p9 = scmp.ne.s32.totalorder %s420_s17, 0 }
 0x1ce   :  { %424 = shalt.err (%p521_p9)  }
 0x1cf   :  { %426 = vsyncmov [#allocation3 + $0xd] }
 0x1d2   :  { %s427_s24 = vpop.sfrf %426 }
 0x1d3   :  { %p522_p10 = scmp.ne.s32.totalorder %s427_s24, 0 }
 0x1d5   :  { %431 = shalt.err (%p522_p10)  }
 0x1d6   :  { %433 = vsyncmov [#allocation3 + $0xe] }
 0x1d9   :  { %s434_s25 = vpop.sfrf %433 }
 0x1da   :  { %p523_p11 = scmp.ne.s32.totalorder %s434_s25, 0 }
 0x1dc   :  { %438 = shalt.err (%p523_p11)  }
 0x1dd   :  { %440 = vsyncmov [#allocation3 + $0xf] }
 0x1e0   :  { %s441_s20 = vpop.sfrf %440 }
 0x1e1   :  { %p524_p12 = scmp.ne.s32.totalorder %s441_s20, 0 }
 0x1e3   :  { %445 = shalt.err (%p524_p12)  }

</bundles_post_ra>
